<compile_context>
chip_gen: v5e
topology: v5e:2x2
jax: 0.10.0
libtpu: 0.0.40
codegen_flags: <defaults>
</compile_context>

<pallas_src>
import math

import jax
import jax.numpy as jnp
from jax.experimental import pallas as pl
from jax.experimental.pallas import tpu as pltpu


# ----------------------------- fused Pallas kernel ----------------------------- #

def make_fused_forward_kernel(layer_kinds, n_mats):
    """Build a fused kernel for a fixed (static) layer structure.

    layer_kinds: sequence of "rkhs" / "relu" describing the network.
    Kernel signature: (scales_smem, f_vmem, M_1, ..., M_k, out_vmem).
    """

    def kernel(scales_ref, f_ref, *rest):
        m_refs = rest[:n_mats]
        o_ref = rest[n_mats]

        # in_scale from SMEM (runtime scalar -> no retrace when rescale() is called)
        x = f_ref[...] * scales_ref[0]

        mi = 0
        for kind in layer_kinds:          # unrolled at trace time (static structure)
            if kind == "rkhs":
                # One MXU matmul per RKHS layer: composite M = delta * K1 @ W @ K2.T
                x = jnp.dot(x, m_refs[mi][...], preferred_element_type=jnp.float32)
                mi += 1
            else:                         # "relu"
                x = jnp.maximum(x, 0.0)

        o_ref[...] = x * scales_ref[1]    # out_scale

    return kernel


# ------------------------------- FunctionalNetwork ------------------------------ #

def gaussian_kernel_matrix(mesh, centers, bandwidth=0.2):
    # Deterministic RKHS kernel evaluation matrix K[n, m] = k(mesh[n], centers[m]).
    d = mesh[:, None] - centers[None, :]
    return jnp.exp(-(d ** 2) / (2.0 * bandwidth ** 2)).astype(jnp.float32)


class FunctionalNetworkPallas:
    """JAX/Pallas re-implementation of FunctionalNetwork.forward.

    `layers` is a list of tuples:
      ("rkhs", K1, W, K2, delta_xi)  -> ProdRKHSWeight RKHSLayer
      ("relu",)                      -> non-RKHS (activation) layer
    """

    def __init__(self, layers):
        self.layers = layers
        self.in_scale = 1.0
        self.out_scale = 1.0

        # Fold each RKHS layer's constant chain into a single [N_in, N_out] matrix.
        self.layer_kinds = tuple(l[0] for l in layers)
        composites = []
        for layer in layers:
            if layer[0] == "rkhs":
                _, K1, W, K2, delta = layer
                M = ((K1 @ W) @ K2.T * jnp.float32(delta)).astype(jnp.float32)
                composites.append(M)
        self.composites = tuple(composites)

        self._kernel = make_fused_forward_kernel(self.layer_kinds, len(self.composites))
        self._forward = jax.jit(self._forward_impl)   # cached per input shape

    def rescale(self, in_scale, out_scale):
        self.in_scale = float(in_scale)
        self.out_scale = float(out_scale)

    # --- single fused pallas_call: no grid, no pipelining, all operands in VMEM --- #
    def _forward_impl(self, scales, f, *mats):
        B = f.shape[0]
        N_out = mats[-1].shape[1]
        n_arrays = 1 + len(mats)   # f + composite matrices
        return pl.pallas_call(
            self._kernel,
            out_shape=jax.ShapeDtypeStruct((B, N_out), jnp.float32),
            in_specs=(
                [pl.BlockSpec(memory_space=pltpu.MemorySpace.SMEM)]        # scales
                + [pl.BlockSpec(memory_space=pltpu.MemorySpace.VMEM)] * n_arrays
            ),
            out_specs=pl.BlockSpec(memory_space=pltpu.MemorySpace.VMEM),
        )(scales, f, *mats)

    def __call__(self, f):
        f = f.astype(jnp.float32)   # (double in torch; f32 on TPU, see TODO above)
        scales = jnp.array([self.in_scale, self.out_scale], dtype=jnp.float32)
        return self._forward(scales, f, *self.composites)

    # pure-JAX reference (original un-fused math) for verification
    def reference(self, f):
        f = f.astype(jnp.float32) * self.in_scale
        for layer in self.layers:
            if layer[0] == "rkhs":
                _, K1, W, K2, delta = layer
                f = (f @ K1) @ W @ K2.T * delta
            elif layer[0] == "relu":
                f = jnp.maximum(f, 0.0)
        return f * self.out_scale


def build_network(key):
    """Two ProdRKHS layers with a ReLU in between; deterministic parameters."""
    N0, X1, E1, N1 = 16, 32, 32, 16   # input mesh, xi/eta basis sizes, layer-1 output mesh
    X2, E2, N2 = 32, 32, 16           # layer-2 basis sizes, output mesh

    mesh0 = jnp.linspace(0.0, 1.0, N0)
    mesh1 = jnp.linspace(0.0, 1.0, N1)
    mesh2 = jnp.linspace(0.0, 1.0, N2)
    cx1 = jnp.linspace(0.0, 1.0, X1)
    ce1 = jnp.linspace(0.0, 1.0, E1)
    cx2 = jnp.linspace(0.0, 1.0, X2)
    ce2 = jnp.linspace(0.0, 1.0, E2)

    K1_l1 = gaussian_kernel_matrix(mesh0, cx1)      # [N0, X1]
    K2_l1 = gaussian_kernel_matrix(mesh1, ce1)      # [N1, E1]
    K1_l2 = gaussian_kernel_matrix(mesh1, cx2)      # [N1, X2]
    K2_l2 = gaussian_kernel_matrix(mesh2, ce2)      # [N2, E2]

    k1, k2 = jax.random.split(key)
    # W shape = [prod(xi_sizes), prod(eta_sizes)]; sqrt(2) gain as in initialize_weights().
    W1 = jax.random.normal(k1, (X1, E1), dtype=jnp.float32) * math.sqrt(2.0 / X1)
    W2 = jax.random.normal(k2, (X2, E2), dtype=jnp.float32) * math.sqrt(2.0 / X2)

    delta1 = 1.0 / N0   # quadrature weight prod(delta_xi) on the input mesh
    delta2 = 1.0 / N1

    layers = [
        ("rkhs", K1_l1, W1, K2_l1, delta1),
        ("relu",),
        ("rkhs", K1_l2, W2, K2_l2, delta2),
    ]
    return FunctionalNetworkPallas(layers)


if __name__ == "__main__":
    key = jax.random.PRNGKey(0)
    knet, kin = jax.random.split(key)

    net = build_network(knet)
    net.rescale(2.0, 0.5)

    B, N0 = 8, 16
    f = jax.random.normal(kin, (B, N0), dtype=jnp.float32)

    out = net(f)
    out = jax.block_until_ready(out)

    ref = net.reference(f)
    assert out.shape == (B, 16) and out.dtype == jnp.float32
    assert jnp.allclose(out, ref, rtol=1e-4, atol=1e-4), "mismatch vs pure-JAX reference"

    # rescale() changes runtime SMEM scalars only — no retrace/recompile.
    net.rescale(1.0, 1.0)
    out2 = jax.block_until_ready(net(f))
    ref2 = net.reference(f)
    assert jnp.allclose(out2, ref2, rtol=1e-4, atol=1e-4), "mismatch after rescale"

    print("KERNEL_OK")
</pallas_src>

<mosaic_0001>
module attributes {stable_mosaic.version = 11 : i64} {
  func.func @kernel(%arg0: memref<2xf32, #tpu.memory_space<smem>>, %arg1: memref<8x16xf32, #tpu.memory_space<vmem>>, %arg2: memref<16x16xf32, #tpu.memory_space<vmem>>, %arg3: memref<16x16xf32, #tpu.memory_space<vmem>>, %arg4: memref<8x16xf32, #tpu.memory_space<vmem>>) attributes {dimension_semantics = [], scalar_prefetch = 0 : i64, scratch_operands = 0 : i64, tpu.core_type = #tpu.core_type<tc>} {
    %c0 = arith.constant 0 : index
    %c0_0 = arith.constant 0 : index
    %0 = vector.load %arg1[%c0, %c0_0] : memref<8x16xf32, #tpu.memory_space<vmem>>, vector<8x16xf32>
    %c0_1 = arith.constant 0 : index
    %1 = memref.load %arg0[%c0_1] : memref<2xf32, #tpu.memory_space<smem>>
    %2 = vector.broadcast %1 : f32 to vector<8x16xf32>
    %3 = arith.mulf %0, %2 : vector<8x16xf32>
    %c0_2 = arith.constant 0 : index
    %c0_3 = arith.constant 0 : index
    %4 = vector.load %arg2[%c0_2, %c0_3] : memref<16x16xf32, #tpu.memory_space<vmem>>, vector<16x16xf32>
    %cst = arith.constant dense<0.000000e+00> : vector<8x16xf32>
    %5 = tpu.matmul %3, %4, %cst {dimension_numbers = #tpu.dot_dimension_numbers<[1], [0], [0], [1], [0, 0, 1, 1], [], []>} : vector<8x16xf32>, vector<16x16xf32>, vector<8x16xf32> -> vector<8x16xf32>
    %cst_4 = arith.constant 0.000000e+00 : f32
    %6 = vector.broadcast %cst_4 : f32 to vector<8x16xf32>
    %7 = arith.maximumf %5, %6 : vector<8x16xf32>
    %c0_5 = arith.constant 0 : index
    %c0_6 = arith.constant 0 : index
    %8 = vector.load %arg3[%c0_5, %c0_6] : memref<16x16xf32, #tpu.memory_space<vmem>>, vector<16x16xf32>
    %cst_7 = arith.constant dense<0.000000e+00> : vector<8x16xf32>
    %9 = tpu.matmul %7, %8, %cst_7 {dimension_numbers = #tpu.dot_dimension_numbers<[1], [0], [0], [1], [0, 0, 1, 1], [], []>} : vector<8x16xf32>, vector<16x16xf32>, vector<8x16xf32> -> vector<8x16xf32>
    %c1 = arith.constant 1 : index
    %10 = memref.load %arg0[%c1] : memref<2xf32, #tpu.memory_space<smem>>
    %11 = vector.broadcast %10 : f32 to vector<8x16xf32>
    %12 = arith.mulf %9, %11 : vector<8x16xf32>
    %c0_8 = arith.constant 0 : index
    %c0_9 = arith.constant 0 : index
    %13 = vector.load %arg4[%c0_8, %c0_9] : memref<8x16xf32, #tpu.memory_space<vmem>>, vector<8x16xf32>
    tpu.vector_store %arg4[%c0_8, %c0_9], %12 {strides = array<i32>} : memref<8x16xf32, #tpu.memory_space<vmem>>, vector<8x16xf32>,
    return
  }
}

</mosaic_0001>

<bundles_post_ra>
// kernel: _forward_impl.1
= control target key start
LH: loop header
LB: loop body
LE: loop exit
PB: predicated region body
PF: predicated region fallthrough
CT: control target
= control target key end

     0   :  { %9 = vsyncpa [#allocation5], 0  ;;  %s331_s0 = inlined_call_operand.hbm [shape: f32[2], index: 0, kind: input, shape index: {}]   ;;  %s332_s1 = inlined_call_operand.hbm [shape: f32[8,16], index: 1, kind: input, shape index: {}]   ;;  %s333_s2 = inlined_call_operand.hbm [shape: f32[16,16], index: 2, kind: input, shape index: {}]   ;;  %s334_s3 = inlined_call_operand.hbm [shape: f32[16,16], index: 3, kind: input, shape index: {}]   ;;  %s335_s4 = inlined_call_operand.hbm [shape: f32[8,16], index: 4, kind: output, shape index: {}]  }
   0x1   :  { %10 = vsyncpa [#allocation3], 0 }
   0x2   :  { %11 = vsyncpa [#allocation8], 0  ;;  %s37_s17 = sshll.u32 %s333_s2, 4  ;;  %s38_s17 = int_to_ptr.hbm [resolvable:$true] %s37_s17 }
   0x3   :  { %12 = vsyncpa [#allocation4], 0  ;;  %s281_s18 = smov [#allocation7]   ;;  %s18_s22 = sshll.u32 %s331_s0, 4  ;;  %s19_s22 = int_to_ptr.hbm [resolvable:$true] %s18_s22 }
   0x4   :  { %s39_s19 = sshll.u32 %s281_s18, 4  ;;  %s282_s23 = smov 128   ;;  %s40_s19 = int_to_ptr.vmem [resolvable:$true] %s39_s19 }
   0x5   :  { %s283_s24 = smov 8   ;;  %s284_s25 = smov [#allocation2]  }
   0x6   :  { %45 = dma.hbm_to_vmem [thread:$0]  %s38_s17, 256, %s40_s19, [#allocation8], %s282_s23, %s282_s23, %s283_s24  }
   0x7   :  { %21 = dma.hbm_to_smem %s19_s22, 16, %s284_s25, [#allocation5]  }
   0x8   :  { %s27_s28 = sshll.u32 %s332_s1, 4  ;;  %s285_s2 = smov [#allocation6]   ;;  %s28_s28 = int_to_ptr.hbm [resolvable:$true] %s27_s28 }
   0x9   :  { %s29_s29 = sshll.u32 %s285_s2, 4  ;;  %s50_s6 = sshll.u32 %s334_s3, 4  ;;  %s30_s29 = int_to_ptr.vmem [resolvable:$true] %s29_s29  ;;  %s51_s6 = int_to_ptr.hbm [resolvable:$true] %s50_s6 }
   0xa   :  { %32 = dma.hbm_to_vmem [thread:$0]  %s28_s28, 128, %s30_s29, [#allocation3]  }
   0xb   :  { %s286_s0 = smov [#allocation9]  }
   0xc   :  { %s52_s7 = sshll.u32 %s286_s0, 4  ;;  %s53_s7 = int_to_ptr.vmem [resolvable:$true] %s52_s7 }
   0xd   :  { %58 = dma.hbm_to_vmem [thread:$0]  %s51_s6, 256, %s53_s7, [#allocation8], %s282_s23, %s282_s23, %s283_s24  }
   0xe   :  { %273 = dma.done.wait [#allocation5], 16  }
   0xf   :  { %274 = vsyncadd [#allocation5], 4294967280 }
  0x10   :  { %275 = dma.done.wait [#allocation3], 128  }
  0x11   :  { %276 = vsyncadd [#allocation3], 4294967168 }
  0x12   :  { %277 = dma.done.wait [#allocation8], 512  }
  0x13   :  { %278 = vsyncadd [#allocation8], 4294966784 }
  0x14   :  { %75 = sfence }
  0x15   :  { %v81_v0 = vld [vmem:[#allocation7 + $0x8] sm:$0xff]  ;;  %v80_v1 = vld [vmem:[#allocation7] sm:$0xff]  ;;  %s77_s1 = sld [smem:[#allocation2]]  ;;  %v76_v2 = vld [vmem:[#allocation6] sm:$0xff]  ;;  %vm82_vm0 = vcmask 130048   ;;  %s287_s8 = smov [#allocation10]  }
  0x16   :  { %100 = vmatpush.msra.mxu0 %v81_v0  ;;  %v108_v5 = vld [vmem:[#allocation9 + $0x8] sm:$0xff]  ;;  %v107_v6 = vld [vmem:[#allocation9] sm:$0xff]  ;;  %s157_s3 = sld [smem:[#allocation2 + $0x1]]  ;;  %s141_s9 = sshll.u32 %s287_s8, 4  ;;  %s142_s9 = int_to_ptr.vmem [resolvable:$true] %s141_s9 }
  0x17   :  { %126 = vmatpush.msra.mxu1 %v108_v5  ;;  %s143_s12 = sshll.u32 %s335_s4, 4  ;;  %s144_s12 = int_to_ptr.hbm [resolvable:$true] %s143_s12 }
  0x18   :  { %101 = vmatpush.msra.mxu0 %v80_v1 }
  0x19   :  { %127 = vmatpush.msra.mxu1 %v107_v6 }
  0x1b   :  { %v78_v3 = vstv %s77_s1 }
  0x1c   :  { %v79_v4 = vmul.f32 %v78_v3, %v76_v2  ;;  %v133_v9 = vstv %s157_s3 }
  0x1e   :  { %155 = vmatmul.msk.f32.vlgmr.msra.gmra.mxu0 %vm82_vm0, %v79_v4 }
  0x9b   :  { %v103_v7 = vpop.f32.mrf.mxu0 }
  0x9c   :  { %v106_v8 = vmax.f32 %v103_v7, 0.0 }
  0x9e   :  { %156 = vmatmul.msk.f32.vlgmr.msra.gmra.mxu1 %vm82_vm0, %v106_v8 }
 0x11b   :  { %v129_v10 = vpop.f32.mrf.mxu1 }
 0x11c   :  { %v134_v11 = vmul.f32 %v133_v9, %v129_v10 }
 0x11e   :  { %135 = vst.msk [vmem:[#allocation10] sm:$0xff] %vm82_vm0, %v134_v11 }
 0x11f   :  { %146 = dma.vmem_to_hbm [thread:$0]  %s142_s9, 128, %s144_s12, [#allocation4]  }
 0x120   :  { %279 = dma.done.wait [#allocation4], 128  }
 0x121   :  { %280 = vsyncadd [#allocation4], 4294967168 }
 0x122   :  { %151 = vsyncpa [#allocation3], 1 }
 0x123   :  { %152 = vsyncpa [#allocation8], 1 }
 0x124   :  { %153 = vsyncpa [#allocation4], 1 }
 0x125   :  { %154 = vsyncpa [#allocation5], 1 }

</bundles_post_ra>
